<compile_context>
chip_gen: v7x
topology: tpu7x:2x2x1
jax: 0.10.0
libtpu: 0.0.40
codegen_flags: <defaults>
</compile_context>

<pallas_src>
import functools

import jax
import jax.numpy as jnp
from jax.experimental import pallas as pl
from jax.experimental.pallas import tpu as pltpu


def _round_up(n, m):
    return ((n + m - 1) // m) * m


def _device_kind():
    try:
        return jax.devices()[0].device_kind.lower()
    except Exception:
        return ""


def _vae_kernel(x_ref, eps_ref,
                w_enc_ref, b_enc_ref,
                w_head_ref, b_head_ref,
                w_d1_ref, b_d1_ref,
                w_d2_ref, b_d2_ref,
                out_ref, mu_ref, logvar_ref, *, lat_p):
    # x is pre-cast to bf16 in the wrapper; weights are bf16; biases/eps stay f32.
    xb = x_ref[...]                      # (tb, in_p)   bf16
    eps = eps_ref[...]                   # (tb, lat_p)  f32

    # ---- encoder: Linear + ReLU (f32 accumulate) ----
    h = jnp.dot(xb, w_enc_ref[...], preferred_element_type=jnp.float32) + b_enc_ref[...]
    h = jnp.maximum(h, 0.0)

    # ---- fused mu|logvar head: one (tb, 2*lat_p) matmul, split at lane-aligned lat_p ----
    head = (jnp.dot(h.astype(jnp.bfloat16), w_head_ref[...],
                    preferred_element_type=jnp.float32) + b_head_ref[...])
    mu = head[:, :lat_p]
    logvar = head[:, lat_p:]

    # ---- reparameterize: z = mu + eps * exp(0.5 * logvar)  (f32, exp on EUP) ----
    std = jnp.exp(0.5 * logvar)
    z = mu + eps * std

    # ---- decoder: Linear + ReLU + Linear + Sigmoid ----
    d1 = (jnp.dot(z.astype(jnp.bfloat16), w_d1_ref[...],
                  preferred_element_type=jnp.float32) + b_d1_ref[...])
    d1 = jnp.maximum(d1, 0.0)
    d2 = (jnp.dot(d1.astype(jnp.bfloat16), w_d2_ref[...],
                  preferred_element_type=jnp.float32) + b_d2_ref[...])
    # Numerically stable, EUP-routed sigmoid: sigma(x) = 0.5*(tanh(x/2)+1).
    out = 0.5 * (jnp.tanh(0.5 * d2) + 1.0)

    out_ref[...] = out
    mu_ref[...] = mu
    logvar_ref[...] = logvar


def _choose_batch_tile(B, batch_tile, hid_p, kind):
    """Pick the batch tile: multiple of 16 (bf16 packing), minimize batch-padding
    waste, and guarantee >=2 grid steps on 2-TC (v7x-class) chips when possible."""
    is_v5 = "v5" in kind
    is_v7 = ("v7" in kind) or ("tpu7" in kind) or ("tpu 7" in kind)
    cap = max(16, _round_up(batch_tile, 16))
    b16 = _round_up(max(B, 1), 16)
    if b16 <= cap:
        # Small batch fits one tile.  On v7x split into two tiles (when >=32 rows)
        # so the "parallel" batch axis actually shards across both TensorCores.
        if is_v7 and b16 >= 32:
            return _round_up(-(-b16 // 2), 16)
        return b16
    # Large batch: choose from {128, 256} (capped) the tile minimizing padded waste.
    cands = sorted({c for c in (128, 256) if c <= cap}) or [cap]
    prefer_small = is_v5 or hid_p >= 2048          # lower vreg / store-slot pressure
    def score(c):
        waste = _round_up(B, c) - B
        return (waste, c if prefer_small else -c)
    return min(cands, key=score)


@functools.partial(jax.jit, static_argnames=("batch_tile",))
def vae_forward(x, eps, params, *, batch_tile=256):
    """Fused VAE forward. x: (B, input_dim) f32; eps: (B, latent_dim) f32.

    Returns (output, mu, logvar) in f32 at the original (unpadded) shapes.
    """
    (w_enc, b_enc, w_mu, b_mu, w_lv, b_lv, w_d1, b_d1, w_d2, b_d2) = params
    B, input_dim = x.shape
    hidden_dim = w_enc.shape[1]
    latent_dim = w_mu.shape[1]

    kind = _device_kind()
    is_v5 = "v5" in kind
    is_v7 = ("v7" in kind) or ("tpu7" in kind) or ("tpu 7" in kind)

    # ---- pad feature dims: lane-dense (>=128); big dims 256-aligned on 256-wide MXUs ----
    big_align = 128 if is_v5 else 256
    in_p = _round_up(input_dim, big_align if input_dim > 128 else 128)
    hid_p = _round_up(hidden_dim, big_align if hidden_dim > 128 else 128)
    lat_p = _round_up(latent_dim, 128)

    tb = _choose_batch_tile(B, batch_tile, hid_p, kind)
    B_p = _round_up(B, tb)

    f32 = jnp.float32
    bf16 = jnp.bfloat16

    def pad2(a, r, c):
        return jnp.pad(a, ((0, r - a.shape[0]), (0, c - a.shape[1])))

    # Inputs: x in bf16 (matmul operand), eps stays f32.
    x_p = pad2(x, B_p, in_p).astype(bf16)
    eps_p = pad2(eps, B_p, lat_p).astype(f32)

    # Weights (stored (in, out)) -> padded bf16; biases -> padded (1, out) f32.
    w_enc_p = pad2(w_enc, in_p, hid_p).astype(bf16)
    b_enc_p = jnp.pad(b_enc, (0, hid_p - hidden_dim)).reshape(1, hid_p).astype(f32)

    # Fused mu|logvar head: (hid_p, 2*lat_p), each half zero-padded to lat_p.
    w_head_p = jnp.concatenate(
        [pad2(w_mu, hid_p, lat_p), pad2(w_lv, hid_p, lat_p)], axis=1).astype(bf16)
    b_head_p = jnp.concatenate(
        [jnp.pad(b_mu, (0, lat_p - latent_dim)),
         jnp.pad(b_lv, (0, lat_p - latent_dim))], axis=0).reshape(1, 2 * lat_p).astype(f32)

    w_d1_p = pad2(w_d1, lat_p, hid_p).astype(bf16)
    b_d1_p = jnp.pad(b_d1, (0, hid_p - hidden_dim)).reshape(1, hid_p).astype(f32)
    w_d2_p = pad2(w_d2, hid_p, in_p).astype(bf16)
    b_d2_p = jnp.pad(b_d2, (0, in_p - input_dim)).reshape(1, in_p).astype(f32)

    grid = (B_p // tb,)

    # ---- BlockSpecs: streamed batch tiles (double-buffered by default) vs
    #      grid-constant weights/biases (single-buffered: index_map never changes). ----
    try:
        const_kwargs = dict(pipeline_mode=pl.Buffered(1))
        _ = pl.BlockSpec((8, 128), lambda i: (0, 0), **const_kwargs)  # probe support
        const_buf = 1
    except Exception:  # older jax without pipeline_mode / Buffered(1)
        const_kwargs = {}
        const_buf = 2

    def batch_spec(feat):
        return pl.BlockSpec((tb, feat), lambda i: (i, 0))

    def const_spec(arr):
        return pl.BlockSpec(arr.shape, lambda i: (0, 0), **const_kwargs)

    # ---- explicit VMEM budget (bytes): weights x buffer_count + 2x streamed tiles
    #      + f32 intermediate headroom, capped per chip generation. ----
    weight_bytes = 2 * (in_p * hid_p + hid_p * 2 * lat_p + lat_p * hid_p + hid_p * in_p)
    bias_bytes = 4 * (hid_p + 2 * lat_p + hid_p + in_p)
    const_bytes = const_buf * (weight_bytes + bias_bytes)
    stream_bytes = 2 * tb * (2 * in_p + 4 * lat_p       # x (bf16), eps (f32) in
                             + 4 * in_p + 2 * 4 * lat_p)  # out, mu, logvar (f32) out
    scratch_bytes = 4 * tb * max(hid_p, 2 * lat_p, in_p) * 4   # f32 intermediates headroom
    vmem_cap = (48 << 20) if is_v7 else (100 << 20)
    vmem_limit = int(min(max(const_bytes + stream_bytes + scratch_bytes + (4 << 20),
                             32 << 20), vmem_cap))

    # ---- advisory cost estimate for the surrounding XLA schedule ----
    flops = 2 * B_p * (in_p * hid_p + hid_p * 2 * lat_p + lat_p * hid_p + hid_p * in_p)
    transcendentals = B_p * (lat_p + in_p)              # exp (reparam) + tanh (sigmoid)
    bytes_accessed = (weight_bytes + bias_bytes
                      + B_p * (2 * in_p + 4 * lat_p)    # x, eps reads
                      + B_p * (4 * in_p + 8 * lat_p))   # out, mu, logvar writes
    cost = pl.CostEstimate(flops=int(flops), transcendentals=int(transcendentals),
                           bytes_accessed=int(bytes_accessed))

    out_shapes = (
        jax.ShapeDtypeStruct((B_p, in_p), f32),
        jax.ShapeDtypeStruct((B_p, lat_p), f32),
        jax.ShapeDtypeStruct((B_p, lat_p), f32),
    )

    out_p, mu_p, lv_p = pl.pallas_call(
        functools.partial(_vae_kernel, lat_p=lat_p),
        out_shape=out_shapes,
        grid_spec=pltpu.PrefetchScalarGridSpec(
            num_scalar_prefetch=0,
            grid=grid,
            in_specs=[
                batch_spec(in_p),           # x (bf16), streamed over batch
                batch_spec(lat_p),          # eps (f32), streamed over batch
                const_spec(w_enc_p), const_spec(b_enc_p),
                const_spec(w_head_p), const_spec(b_head_p),
                const_spec(w_d1_p), const_spec(b_d1_p),
                const_spec(w_d2_p), const_spec(b_d2_p),
            ],
            out_specs=[
                batch_spec(in_p),           # output
                batch_spec(lat_p),          # mu
                batch_spec(lat_p),          # logvar
            ],
        ),
        compiler_params=pltpu.CompilerParams(
            dimension_semantics=("parallel",),   # batch axis shards across TCs on v7x
            vmem_limit_bytes=vmem_limit,
        ),
        cost_estimate=cost,
    )(x_p, eps_p,
      w_enc_p, b_enc_p, w_head_p, b_head_p, w_d1_p, b_d1_p, w_d2_p, b_d2_p)

    # Slice padded results back to the true widths.
    out = out_p[:B, :input_dim]
    mu = mu_p[:B, :latent_dim]
    logvar = lv_p[:B, :latent_dim]
    return out, mu, logvar


def init_params(key, input_dim, latent_dim, hidden_dim):
    """Deterministic init mirroring nn.Linear shapes; weights stored as (in, out)."""
    ks = jax.random.split(key, 10)

    def lin(kw, kb, fan_in, fan_out):
        bound = 1.0 / jnp.sqrt(fan_in)
        w = jax.random.uniform(kw, (fan_in, fan_out), jnp.float32, -bound, bound)
        b = jax.random.uniform(kb, (fan_out,), jnp.float32, -bound, bound)
        return w, b

    w_enc, b_enc = lin(ks[0], ks[1], input_dim, hidden_dim)
    w_mu, b_mu = lin(ks[2], ks[3], hidden_dim, latent_dim)
    w_lv, b_lv = lin(ks[4], ks[5], hidden_dim, latent_dim)
    w_d1, b_d1 = lin(ks[6], ks[7], latent_dim, hidden_dim)
    w_d2, b_d2 = lin(ks[8], ks[9], hidden_dim, input_dim)
    return (w_enc, b_enc, w_mu, b_mu, w_lv, b_lv, w_d1, b_d1, w_d2, b_d2)


def vae_forward_ref(x, eps, params):
    """Pure-JAX f32 reference matching the PyTorch forward semantics."""
    (w_enc, b_enc, w_mu, b_mu, w_lv, b_lv, w_d1, b_d1, w_d2, b_d2) = params
    h = jax.nn.relu(x @ w_enc + b_enc)
    mu = h @ w_mu + b_mu
    logvar = h @ w_lv + b_lv
    z = mu + eps * jnp.exp(0.5 * logvar)
    d1 = jax.nn.relu(z @ w_d1 + b_d1)
    out = jax.nn.sigmoid(d1 @ w_d2 + b_d2)
    return out, mu, logvar


if __name__ == "__main__":
    # Small shapes consistent with the module's forward: x is (batch, input_dim).
    # batch=6 deliberately exercises the batch-padding path as well.
    batch, input_dim, hidden_dim, latent_dim = 6, 16, 32, 8

    key = jax.random.PRNGKey(0)
    k_x, k_eps, k_params = jax.random.split(key, 3)

    x = jax.random.uniform(k_x, (batch, input_dim), jnp.float32)      # data-like input
    eps = jax.random.normal(k_eps, (batch, latent_dim), jnp.float32)  # reparam noise
    params = init_params(k_params, input_dim, latent_dim, hidden_dim)

    out, mu, logvar = vae_forward(x, eps, params)
    jax.block_until_ready((out, mu, logvar))

    # Verify against the pure-JAX f32 reference (kernel uses bf16 matmul operands,
    # so the tolerance is set accordingly).
    out_r, mu_r, lv_r = vae_forward_ref(x, eps, params)
    assert out.shape == (batch, input_dim)
    assert mu.shape == (batch, latent_dim)
    assert logvar.shape == (batch, latent_dim)
    assert jnp.allclose(out, out_r, atol=2e-2, rtol=2e-2)
    assert jnp.allclose(mu, mu_r, atol=2e-2, rtol=2e-2)
    assert jnp.allclose(logvar, lv_r, atol=2e-2, rtol=2e-2)

    print("KERNEL_OK")
</pallas_src>

<mosaic_0001>
module attributes {stable_mosaic.version = 11 : i64} {
  func.func @_vae_kernel(%arg0: i32, %arg1: memref<16x128xbf16, #tpu.memory_space<vmem>>, %arg2: memref<16x128xf32, #tpu.memory_space<vmem>>, %arg3: memref<128x128xbf16, #tpu.memory_space<vmem>>, %arg4: memref<1x128xf32, #tpu.memory_space<vmem>>, %arg5: memref<128x256xbf16, #tpu.memory_space<vmem>>, %arg6: memref<1x256xf32, #tpu.memory_space<vmem>>, %arg7: memref<128x128xbf16, #tpu.memory_space<vmem>>, %arg8: memref<1x128xf32, #tpu.memory_space<vmem>>, %arg9: memref<128x128xbf16, #tpu.memory_space<vmem>>, %arg10: memref<1x128xf32, #tpu.memory_space<vmem>>, %arg11: memref<16x128xf32, #tpu.memory_space<vmem>>, %arg12: memref<16x128xf32, #tpu.memory_space<vmem>>, %arg13: memref<16x128xf32, #tpu.memory_space<vmem>>) attributes {dimension_semantics = [#tpu.dimension_semantics<parallel>], iteration_bounds = array<i64: 1>, scalar_prefetch = 0 : i64, scratch_operands = 0 : i64, tpu.core_type = #tpu.core_type<tc>, window_params = [{transform_indices = @transform_0, window_bounds = array<i64: 16, 128>}, {transform_indices = @transform_1, window_bounds = array<i64: 16, 128>}, {pipeline_mode = #tpu.pipeline_mode<synchronous>, transform_indices = @transform_2, window_bounds = array<i64: 128, 128>}, {pipeline_mode = #tpu.pipeline_mode<synchronous>, transform_indices = @transform_3, window_bounds = array<i64: 1, 128>}, {pipeline_mode = #tpu.pipeline_mode<synchronous>, transform_indices = @transform_4, window_bounds = array<i64: 128, 256>}, {pipeline_mode = #tpu.pipeline_mode<synchronous>, transform_indices = @transform_5, window_bounds = array<i64: 1, 256>}, {pipeline_mode = #tpu.pipeline_mode<synchronous>, transform_indices = @transform_6, window_bounds = array<i64: 128, 128>}, {pipeline_mode = #tpu.pipeline_mode<synchronous>, transform_indices = @transform_7, window_bounds = array<i64: 1, 128>}, {pipeline_mode = #tpu.pipeline_mode<synchronous>, transform_indices = @transform_8, window_bounds = array<i64: 128, 128>}, {pipeline_mode = #tpu.pipeline_mode<synchronous>, transform_indices = @transform_9, window_bounds = array<i64: 1, 128>}, {transform_indices = @transform_10, window_bounds = array<i64: 16, 128>}, {transform_indices = @transform_11, window_bounds = array<i64: 16, 128>}, {transform_indices = @transform_12, window_bounds = array<i64: 16, 128>}]} {
    %c0 = arith.constant 0 : index
    %c0_0 = arith.constant 0 : index
    %0 = vector.load %arg1[%c0, %c0_0] : memref<16x128xbf16, #tpu.memory_space<vmem>>, vector<16x128xbf16>
    %c0_1 = arith.constant 0 : index
    %c0_2 = arith.constant 0 : index
    %1 = vector.load %arg2[%c0_1, %c0_2] : memref<16x128xf32, #tpu.memory_space<vmem>>, vector<16x128xf32>
    %c0_3 = arith.constant 0 : index
    %c0_4 = arith.constant 0 : index
    %2 = vector.load %arg3[%c0_3, %c0_4] : memref<128x128xbf16, #tpu.memory_space<vmem>>, vector<128x128xbf16>
    %cst = arith.constant dense<0.000000e+00> : vector<16x128xf32>
    %3 = tpu.matmul %0, %2, %cst {dimension_numbers = #tpu.dot_dimension_numbers<[1], [0], [0], [1], [0, 0, 1, 1], [], []>} : vector<16x128xbf16>, vector<128x128xbf16>, vector<16x128xf32> -> vector<16x128xf32>
    %c0_5 = arith.constant 0 : index
    %c0_6 = arith.constant 0 : index
    %4 = vector.load %arg4[%c0_5, %c0_6] : memref<1x128xf32, #tpu.memory_space<vmem>>, vector<1x128xf32>
    %5 = vector.broadcast %4 : vector<1x128xf32> to vector<16x128xf32>
    %6 = arith.addf %3, %5 : vector<16x128xf32>
    %cst_7 = arith.constant 0.000000e+00 : f32
    %7 = vector.broadcast %cst_7 : f32 to vector<16x128xf32>
    %8 = arith.maximumf %6, %7 : vector<16x128xf32>
    %9 = arith.truncf %8 : vector<16x128xf32> to vector<16x128xbf16>
    %c0_8 = arith.constant 0 : index
    %c0_9 = arith.constant 0 : index
    %10 = vector.load %arg5[%c0_8, %c0_9] : memref<128x256xbf16, #tpu.memory_space<vmem>>, vector<128x256xbf16>
    %cst_10 = arith.constant dense<0.000000e+00> : vector<16x256xf32>
    %11 = tpu.matmul %9, %10, %cst_10 {dimension_numbers = #tpu.dot_dimension_numbers<[1], [0], [0], [1], [0, 0, 1, 1], [], []>} : vector<16x128xbf16>, vector<128x256xbf16>, vector<16x256xf32> -> vector<16x256xf32>
    %c0_11 = arith.constant 0 : index
    %c0_12 = arith.constant 0 : index
    %12 = vector.load %arg6[%c0_11, %c0_12] : memref<1x256xf32, #tpu.memory_space<vmem>>, vector<1x256xf32>
    %13 = vector.broadcast %12 : vector<1x256xf32> to vector<16x256xf32>
    %14 = arith.addf %11, %13 : vector<16x256xf32>
    %15 = vector.extract_strided_slice %14 {offsets = [0, 0], sizes = [16, 128], strides = [1, 1]} : vector<16x256xf32> to vector<16x128xf32>
    %16 = vector.extract_strided_slice %14 {offsets = [0, 128], sizes = [16, 128], strides = [1, 1]} : vector<16x256xf32> to vector<16x128xf32>
    %cst_13 = arith.constant 5.000000e-01 : f32
    %17 = vector.broadcast %cst_13 : f32 to vector<16x128xf32>
    %18 = arith.mulf %17, %16 : vector<16x128xf32>
    %19 = math.exp %18 : vector<16x128xf32>
    %20 = arith.mulf %1, %19 : vector<16x128xf32>
    %21 = arith.addf %15, %20 : vector<16x128xf32>
    %22 = arith.truncf %21 : vector<16x128xf32> to vector<16x128xbf16>
    %c0_14 = arith.constant 0 : index
    %c0_15 = arith.constant 0 : index
    %23 = vector.load %arg7[%c0_14, %c0_15] : memref<128x128xbf16, #tpu.memory_space<vmem>>, vector<128x128xbf16>
    %cst_16 = arith.constant dense<0.000000e+00> : vector<16x128xf32>
    %24 = tpu.matmul %22, %23, %cst_16 {dimension_numbers = #tpu.dot_dimension_numbers<[1], [0], [0], [1], [0, 0, 1, 1], [], []>} : vector<16x128xbf16>, vector<128x128xbf16>, vector<16x128xf32> -> vector<16x128xf32>
    %c0_17 = arith.constant 0 : index
    %c0_18 = arith.constant 0 : index
    %25 = vector.load %arg8[%c0_17, %c0_18] : memref<1x128xf32, #tpu.memory_space<vmem>>, vector<1x128xf32>
    %26 = vector.broadcast %25 : vector<1x128xf32> to vector<16x128xf32>
    %27 = arith.addf %24, %26 : vector<16x128xf32>
    %cst_19 = arith.constant 0.000000e+00 : f32
    %28 = vector.broadcast %cst_19 : f32 to vector<16x128xf32>
    %29 = arith.maximumf %27, %28 : vector<16x128xf32>
    %30 = arith.truncf %29 : vector<16x128xf32> to vector<16x128xbf16>
    %c0_20 = arith.constant 0 : index
    %c0_21 = arith.constant 0 : index
    %31 = vector.load %arg9[%c0_20, %c0_21] : memref<128x128xbf16, #tpu.memory_space<vmem>>, vector<128x128xbf16>
    %cst_22 = arith.constant dense<0.000000e+00> : vector<16x128xf32>
    %32 = tpu.matmul %30, %31, %cst_22 {dimension_numbers = #tpu.dot_dimension_numbers<[1], [0], [0], [1], [0, 0, 1, 1], [], []>} : vector<16x128xbf16>, vector<128x128xbf16>, vector<16x128xf32> -> vector<16x128xf32>
    %c0_23 = arith.constant 0 : index
    %c0_24 = arith.constant 0 : index
    %33 = vector.load %arg10[%c0_23, %c0_24] : memref<1x128xf32, #tpu.memory_space<vmem>>, vector<1x128xf32>
    %34 = vector.broadcast %33 : vector<1x128xf32> to vector<16x128xf32>
    %35 = arith.addf %32, %34 : vector<16x128xf32>
    %cst_25 = arith.constant 5.000000e-01 : f32
    %36 = vector.broadcast %cst_25 : f32 to vector<16x128xf32>
    %37 = arith.mulf %36, %35 : vector<16x128xf32>
    %38 = math.tanh %37 : vector<16x128xf32>
    %cst_26 = arith.constant 1.000000e+00 : f32
    %39 = vector.broadcast %cst_26 : f32 to vector<16x128xf32>
    %40 = arith.addf %38, %39 : vector<16x128xf32>
    %cst_27 = arith.constant 5.000000e-01 : f32
    %41 = vector.broadcast %cst_27 : f32 to vector<16x128xf32>
    %42 = arith.mulf %41, %40 : vector<16x128xf32>
    %c0_28 = arith.constant 0 : index
    %c0_29 = arith.constant 0 : index
    %43 = vector.load %arg11[%c0_28, %c0_29] : memref<16x128xf32, #tpu.memory_space<vmem>>, vector<16x128xf32>
    tpu.vector_store %arg11[%c0_28, %c0_29], %42 {strides = array<i32>} : memref<16x128xf32, #tpu.memory_space<vmem>>, vector<16x128xf32>,
    %c0_30 = arith.constant 0 : index
    %c0_31 = arith.constant 0 : index
    %44 = vector.load %arg12[%c0_30, %c0_31] : memref<16x128xf32, #tpu.memory_space<vmem>>, vector<16x128xf32>
    tpu.vector_store %arg12[%c0_30, %c0_31], %15 {strides = array<i32>} : memref<16x128xf32, #tpu.memory_space<vmem>>, vector<16x128xf32>,
    %c0_32 = arith.constant 0 : index
    %c0_33 = arith.constant 0 : index
    %45 = vector.load %arg13[%c0_32, %c0_33] : memref<16x128xf32, #tpu.memory_space<vmem>>, vector<16x128xf32>
    tpu.vector_store %arg13[%c0_32, %c0_33], %16 {strides = array<i32>} : memref<16x128xf32, #tpu.memory_space<vmem>>, vector<16x128xf32>,
    return
  }
  func.func @transform_0(%arg0: i32) -> (i32, i32) {
    %c0_i32 = arith.constant 0 : i32
    %c0_i32_0 = arith.constant 0 : i32
    return %arg0, %c0_i32 : i32, i32
  }
  func.func @transform_1(%arg0: i32) -> (i32, i32) {
    %c0_i32 = arith.constant 0 : i32
    %c0_i32_0 = arith.constant 0 : i32
    return %arg0, %c0_i32 : i32, i32
  }
  func.func @transform_2(%arg0: i32) -> (i32, i32) {
    %c0_i32 = arith.constant 0 : i32
    %c0_i32_0 = arith.constant 0 : i32
    %c0_i32_1 = arith.constant 0 : i32
    return %c0_i32, %c0_i32_0 : i32, i32
  }
  func.func @transform_3(%arg0: i32) -> (i32, i32) {
    %c0_i32 = arith.constant 0 : i32
    %c0_i32_0 = arith.constant 0 : i32
    %c0_i32_1 = arith.constant 0 : i32
    return %c0_i32, %c0_i32_0 : i32, i32
  }
  func.func @transform_4(%arg0: i32) -> (i32, i32) {
    %c0_i32 = arith.constant 0 : i32
    %c0_i32_0 = arith.constant 0 : i32
    %c0_i32_1 = arith.constant 0 : i32
    return %c0_i32, %c0_i32_0 : i32, i32
  }
  func.func @transform_5(%arg0: i32) -> (i32, i32) {
    %c0_i32 = arith.constant 0 : i32
    %c0_i32_0 = arith.constant 0 : i32
    %c0_i32_1 = arith.constant 0 : i32
    return %c0_i32, %c0_i32_0 : i32, i32
  }
  func.func @transform_6(%arg0: i32) -> (i32, i32) {
    %c0_i32 = arith.constant 0 : i32
    %c0_i32_0 = arith.constant 0 : i32
    %c0_i32_1 = arith.constant 0 : i32
    return %c0_i32, %c0_i32_0 : i32, i32
  }
  func.func @transform_7(%arg0: i32) -> (i32, i32) {
    %c0_i32 = arith.constant 0 : i32
    %c0_i32_0 = arith.constant 0 : i32
    %c0_i32_1 = arith.constant 0 : i32
    return %c0_i32, %c0_i32_0 : i32, i32
  }
  func.func @transform_8(%arg0: i32) -> (i32, i32) {
    %c0_i32 = arith.constant 0 : i32
    %c0_i32_0 = arith.constant 0 : i32
    %c0_i32_1 = arith.constant 0 : i32
    return %c0_i32, %c0_i32_0 : i32, i32
  }
  func.func @transform_9(%arg0: i32) -> (i32, i32) {
    %c0_i32 = arith.constant 0 : i32
    %c0_i32_0 = arith.constant 0 : i32
    %c0_i32_1 = arith.constant 0 : i32
    return %c0_i32, %c0_i32_0 : i32, i32
  }
  func.func @transform_10(%arg0: i32) -> (i32, i32) {
    %c0_i32 = arith.constant 0 : i32
    %c0_i32_0 = arith.constant 0 : i32
    return %arg0, %c0_i32 : i32, i32
  }
  func.func @transform_11(%arg0: i32) -> (i32, i32) {
    %c0_i32 = arith.constant 0 : i32
    %c0_i32_0 = arith.constant 0 : i32
    return %arg0, %c0_i32 : i32, i32
  }
  func.func @transform_12(%arg0: i32) -> (i32, i32) {
    %c0_i32 = arith.constant 0 : i32
    %c0_i32_0 = arith.constant 0 : i32
    return %arg0, %c0_i32 : i32, i32
  }
}

</mosaic_0001>

<bundles_post_ra>
// kernel: vae_forward.1
= control target key start
LH: loop header
LB: loop body
LE: loop exit
PB: predicated region body
PF: predicated region fallthrough
CT: control target
= control target key end

     0   :  { %v770_v0 = vmov 0.0   ;;  %vm771_vm0 = vmmov 0   ;;  %v772_v26 = vmov 0   ;;  %v182_v51 = vlaneseq  ;;  %s1027_s2 = inlined_call_operand.vmem [shape: bf16[128,128], index: 2, kind: input, shape index: {}]   ;;  %s1028_s4 = inlined_call_operand.vmem [shape: bf16[128,256], index: 4, kind: input, shape index: {}]   ;;  %s1029_s0 = inlined_call_operand.vmem [shape: bf16[16,128], index: 0, kind: input, shape index: {}]   ;;  %s1030_s6 = inlined_call_operand.vmem [shape: bf16[128,128], index: 6, kind: input, shape index: {}]   ;;  %s1031_s3 = inlined_call_operand.vmem [shape: f32[1,128], index: 3, kind: input, shape index: {}]   ;;  %s1032_s8 = inlined_call_operand.vmem [shape: bf16[128,128], index: 8, kind: input, shape index: {}]   ;;  %s1033_s5 = inlined_call_operand.vmem [shape: f32[1,256], index: 5, kind: input, shape index: {}]   ;;  %s1034_s11 = inlined_call_operand.vmem [shape: f32[16,128], index: 11, kind: output, shape index: {1}]   ;;  %s1035_s12 = inlined_call_operand.vmem [shape: f32[16,128], index: 12, kind: output, shape index: {2}]   ;;  %s1036_s1 = inlined_call_operand.vmem [shape: f32[16,128], index: 1, kind: input, shape index: {}]   ;;  %s1037_s7 = inlined_call_operand.vmem [shape: f32[1,128], index: 7, kind: input, shape index: {}]   ;;  %s1038_s9 = inlined_call_operand.vmem [shape: f32[1,128], index: 9, kind: input, shape index: {}]   ;;  %s1039_s10 = inlined_call_operand.vmem [shape: f32[16,128], index: 10, kind: output, shape index: {0}]  }
   0x1   :  { %650 = vmatprep.subr.bf16.mxu0 %v770_v0  ;;  %v713_v1 = vld [vmem:[%s1027_s2] sm:$0xff]   ;;  %666 = vmatprep.mubr.msk.bf16.mxu0 %vm771_vm0, %v770_v0  ;;  %v714_v2 = vld [vmem:[%s1027_s2 + $0x8] sm:$0xff]   ;;  %v715_v3 = vld [vmem:[%s1027_s2 + $0x10] sm:$0xff]  }
   0x2   :  { %651 = vmatpush3.bf16.msra.mxu0 %v713_v1  ;;  %v716_v4 = vld [vmem:[%s1027_s2 + $0x18] sm:$0xff]   ;;  %v722_v5 = vld [vmem:[%s1028_s4 + $0x4] ss:$8 sps:$4 sm:$0xff]   ;;  %v724_v6 = vld [vmem:[%s1028_s4] ss:$8 sps:$4 sm:$0xff]   ;;  %304 = vmatprep.mubr.bf16.mxu1 %v772_v26  ;;  %v183_v52 = vshrl.u32 %v182_v51, 7 }
   0x3   :  { %652 = vmatprep.subr.bf16.mxu0 %v770_v0  ;;  %272 = vmatprep.subr.bf16.mxu1 %v722_v5  ;;  %v725_v7 = vld [vmem:[%s1028_s4 + $0x14] ss:$8 sps:$4 sm:$0xff]   ;;  %v727_v8 = vld [vmem:[%s1028_s4 + $0x10] ss:$8 sps:$4 sm:$0xff]   ;;  %v728_v9 = vld [vmem:[%s1028_s4 + $0x24] ss:$8 sps:$4 sm:$0xff]  }
   0x4   :  { %273 = vmatpush1.bf16.msra.mxu1 %v724_v6  ;;  %v717_v10 = vld [vmem:[%s1027_s2 + $0x20] sm:$0xff]   ;;  %v731_v12 = vld [vmem:[%s1028_s4 + $0x34] ss:$8 sps:$4 sm:$0xff]   ;;  %v718_v13 = vld [vmem:[%s1027_s2 + $0x28] sm:$0xff]   ;;  %v184_v53 = vsub.s32 0, %v183_v52  ;;  %v188_v55 = vsub.s32 1, %v183_v52 }
   0x5   :  { %274 = vmatprep.subr.bf16.mxu1 %v725_v7  ;;  %v730_v11 = vld [vmem:[%s1028_s4 + $0x20] ss:$8 sps:$4 sm:$0xff]   ;;  %v733_v14 = vld [vmem:[%s1028_s4 + $0x30] ss:$8 sps:$4 sm:$0xff]   ;;  %v734_v15 = vld [vmem:[%s1028_s4 + $0x44] ss:$8 sps:$4 sm:$0xff]  }
   0x6   :  { %653 = vmatpush3.bf16.msra.mxu0 %v714_v2  ;;  %v719_v16 = vld [vmem:[%s1027_s2 + $0x30] sm:$0xff]   ;;  %v736_v17 = vld [vmem:[%s1028_s4 + $0x40] ss:$8 sps:$4 sm:$0xff]   ;;  %v720_v19 = vld [vmem:[%s1027_s2 + $0x38] sm:$0xff]  }
   0x7   :  { %654 = vmatprep.subr.bf16.mxu0 %v770_v0  ;;  %v737_v18 = vld [vmem:[%s1028_s4 + $0x54] ss:$8 sps:$4 sm:$0xff]   ;;  %v739_v20 = vld [vmem:[%s1028_s4 + $0x50] ss:$8 sps:$4 sm:$0xff]   ;;  %v721_v21 = vld [vmem:[%s1029_s0] sm:$0xff]  }
   0x8   :  { %275 = vmatpush1.bf16.msra.mxu1 %v727_v8  ;;  %v740_v22 = vld [vmem:[%s1028_s4 + $0x64] ss:$8 sps:$4 sm:$0xff]   ;;  %v742_v23 = vld [vmem:[%s1028_s4 + $0x60] ss:$8 sps:$4 sm:$0xff]   ;;  %v743_v24 = vld [vmem:[%s1028_s4 + $0x74] ss:$8 sps:$4 sm:$0xff]  }
   0x9   :  { %276 = vmatprep.subr.bf16.mxu1 %v728_v9  ;;  %v745_v25 = vld [vmem:[%s1028_s4 + $0x70] ss:$8 sps:$4 sm:$0xff]   ;;  %v746_v27 = vld [vmem:[%s1030_s6] sm:$0xff]   ;;  %v747_v38 = vld [vmem:[%s1030_s6 + $0x8] sm:$0xff]  }
   0xa   :  { %655 = vmatpush3.bf16.msra.mxu0 %v715_v3  ;;  %v579_v28 = vld [vmem:[%s1031_s3] ss:$0 sm:$0xff]  ;;  %v748_v39 = vld [vmem:[%s1030_s6 + $0x10] sm:$0xff]   ;;  %v749_v40 = vld [vmem:[%s1030_s6 + $0x18] sm:$0xff]  }
   0xb   :  { %656 = vmatprep.subr.bf16.mxu0 %v770_v0  ;;  %v750_v41 = vld [vmem:[%s1030_s6 + $0x20] sm:$0xff]   ;;  %v751_v42 = vld [vmem:[%s1030_s6 + $0x28] sm:$0xff]   ;;  %v752_v43 = vld [vmem:[%s1030_s6 + $0x30] sm:$0xff]  }
   0xc   :  { %277 = vmatpush1.bf16.msra.mxu1 %v730_v11  ;;  %v753_v44 = vld [vmem:[%s1030_s6 + $0x38] sm:$0xff]   ;;  %v754_v45 = vld [vmem:[%s1032_s8] sm:$0xff]   ;;  %v755_v46 = vld [vmem:[%s1032_s8 + $0x8] sm:$0xff]  }
   0xd   :  { %278 = vmatprep.subr.bf16.mxu1 %v731_v12  ;;  %v756_v47 = vld [vmem:[%s1032_s8 + $0x10] sm:$0xff]   ;;  %v757_v48 = vld [vmem:[%s1032_s8 + $0x18] sm:$0xff]   ;;  %v758_v49 = vld [vmem:[%s1032_s8 + $0x20] sm:$0xff]  }
   0xe   :  { %657 = vmatpush3.bf16.msra.mxu0 %v716_v4  ;;  %v759_v50 = vld [vmem:[%s1032_s8 + $0x28] sm:$0xff]   ;;  %v180_v54 = vld [vmem:[%s1033_s5] sm:$0x3] }
   0xf   :  { %658 = vmatprep.subr.bf16.mxu0 %v770_v0  ;;  %v185_v56 = vrot.slane %v180_v54, %v184_v53  ;;  %v189_v57 = vrot.slane %v180_v54, %v188_v55  ;;  %v41_v7 = vld [vmem:[%s1036_s1] sm:$0xff]  ;;  %v42_v9 = vld [vmem:[%s1036_s1 + $0x8] sm:$0xff] }
  0x10   :  { %279 = vmatpush1.bf16.msra.mxu1 %v733_v14 }
  0x11   :  { %280 = vmatprep.subr.bf16.mxu1 %v734_v15 }
  0x12   :  { %659 = vmatpush3.bf16.msra.mxu0 %v717_v10 }
  0x13   :  { %660 = vmatprep.subr.bf16.mxu0 %v770_v0 }
  0x14   :  { %281 = vmatpush1.bf16.msra.mxu1 %v736_v17  ;;  %v761_v17 = vld [vmem:[%s1032_s8 + $0x38] sm:$0xff]  }
  0x15   :  { %282 = vmatprep.subr.bf16.mxu1 %v737_v18  ;;  %v605_v18 = vld [vmem:[%s1037_s7] ss:$0 sm:$0xff] }
  0x16   :  { %661 = vmatpush3.bf16.msra.mxu0 %v718_v13 }
  0x17   :  { %662 = vmatprep.subr.bf16.mxu0 %v770_v0 }
  0x18   :  { %283 = vmatpush1.bf16.msra.mxu1 %v739_v20 }
  0x19   :  { %284 = vmatprep.subr.bf16.mxu1 %v740_v22 }
  0x1a   :  { %663 = vmatpush3.bf16.msra.mxu0 %v719_v16  ;;  %v760_v16 = vld [vmem:[%s1032_s8 + $0x30] sm:$0xff]  }
  0x1b   :  { %664 = vmatprep.subr.bf16.mxu0 %v770_v0 }
  0x1c   :  { %285 = vmatpush1.bf16.msra.mxu1 %v742_v23 }
  0x1d   :  { %286 = vmatprep.subr.bf16.mxu1 %v743_v24 }
  0x1e   :  { %665 = vmatpush3.bf16.msra.mxu0 %v720_v19 }
  0x1f   :  { %670 = vmatprep.subr.bf16.mxu0 %v770_v0 }
  0x20   :  { %287 = vmatpush1.bf16.msra.mxu1 %v745_v25 }
  0x21   :  { %667 = vmatmul.mubr.bf16.vlgmr.msra.gmra.mrb[0].mxu0 %v721_v21  ;;  %690 = vmatprep.subr.bf16.mxu1 %v770_v0 }
  0x22   :  { %686 = vmatprep.mubr.msk.bf16.mxu0 %vm771_vm0, %v770_v0  ;;  %671 = vmatpush3.bf16.msra.mxu0 %v746_v27 }
  0x23   :  { %672 = vmatprep.subr.bf16.mxu0 %v770_v0 }
  0x26   :  { %673 = vmatpush3.bf16.msra.mxu0 %v747_v38 }
  0x27   :  { %674 = vmatprep.subr.bf16.mxu0 %v770_v0 }
  0x2a   :  { %675 = vmatpush3.bf16.msra.mxu0 %v748_v39 }
  0x2b   :  { %676 = vmatprep.subr.bf16.mxu0 %v770_v0 }
  0x2e   :  { %677 = vmatpush3.bf16.msra.mxu0 %v749_v40 }
  0x2f   :  { %678 = vmatprep.subr.bf16.mxu0 %v770_v0 }
  0x32   :  { %679 = vmatpush3.bf16.msra.mxu0 %v750_v41 }
  0x33   :  { %680 = vmatprep.subr.bf16.mxu0 %v770_v0 }
  0x36   :  { %681 = vmatpush3.bf16.msra.mxu0 %v751_v42 }
  0x37   :  { %682 = vmatprep.subr.bf16.mxu0 %v770_v0 }
  0x3a   :  { %683 = vmatpush3.bf16.msra.mxu0 %v752_v43 }
  0x3b   :  { %684 = vmatprep.subr.bf16.mxu0 %v770_v0 }
  0x3e   :  { %685 = vmatpush3.bf16.msra.mxu0 %v753_v44 }
  0xf4   :  { %v154_v29 = vpop.f32.mrb[0].mxu0 }
  0xf5   :  { %v155_v30 = vadd.f32 %v579_v28, %v154_v29  ;;  %v668_v31 = vpop.f32.mrb[1].mxu0 }
  0xf6   :  { %v157_v32 = vpop.f32.mrb[2].mxu0 }
  0xf7   :  { %v158_v33 = vadd.f32 %v579_v28, %v157_v32  ;;  %v669_v34 = vpop.f32.mrb[3].mxu0  ;;  %v161_v35 = vmax.f32 %v155_v30, 0.0 }
  0xf9   :  { %v162_v36 = vmax.f32 %v158_v33, 0.0 }
  0xfb   :  { %v163_v37 = vpack.c.bf16 %v162_v36, %v161_v35 }
  0xfd   :  { %305 = vmatmul.mubr.bf16.vlgmr.msra.gmra.mrb[0].mxu1 %v163_v37 }
  0xfe   :  { %706 = vmatprep.mubr.msk.bf16.mxu1 %vm771_vm0, %v770_v0  ;;  %691 = vmatpush3.bf16.msra.mxu1 %v754_v45 }
  0xff   :  { %692 = vmatprep.subr.bf16.mxu1 %v770_v0 }
 0x102   :  { %693 = vmatpush3.bf16.msra.mxu1 %v755_v46 }
 0x103   :  { %694 = vmatprep.subr.bf16.mxu1 %v770_v0 }
 0x106   :  { %695 = vmatpush3.bf16.msra.mxu1 %v756_v47 }
 0x107   :  { %696 = vmatprep.subr.bf16.mxu1 %v770_v0 }
 0x10a   :  { %697 = vmatpush3.bf16.msra.mxu1 %v757_v48 }
 0x10b   :  { %698 = vmatprep.subr.bf16.mxu1 %v770_v0 }
 0x10e   :  { %699 = vmatpush3.bf16.msra.mxu1 %v758_v49 }
 0x10f   :  { %700 = vmatprep.subr.bf16.mxu1 %v770_v0 }
 0x112   :  { %701 = vmatpush3.bf16.msra.mxu1 %v759_v50 }
 0x113   :  { %702 = vmatprep.subr.bf16.mxu1 %v770_v0 }
 0x116   :  { %703 = vmatpush3.bf16.msra.mxu1 %v760_v16 }
 0x117   :  { %704 = vmatprep.subr.bf16.mxu1 %v770_v0  ;;  %v614_v0 = vld [vmem:[%s1038_s9] ss:$0 sm:$0xff] }
 0x11a   :  { %705 = vmatpush3.bf16.msra.mxu1 %v761_v17 }
 0x1d0   :  { %v306_v58 = vpop.f32.mrb[0].mxu1 }
 0x1d1   :  { %v307_v59 = vadd.f32 %v306_v58, %v185_v56  ;;  %v308_v60 = vpop.f32.mrb[1].mxu1 }
 0x1d2   :  { %v309_v61 = vadd.f32 %v308_v60, %v189_v57  ;;  %v310_v62 = vpop.f32.mrb[2].mxu1 }
 0x1d3   :  { %563 = vst [vmem:[%s1034_s11] sm:$0xff] %v307_v59  ;;  %v311_v63 = vadd.f32 %v310_v62, %v185_v56  ;;  %v312_v1 = vpop.f32.mrb[3].mxu1 }
 0x1d4   :  { %v315_v2 = vmul.f32 0.5, %v309_v61  ;;  %565 = vst [vmem:[%s1035_s12] sm:$0xff] %v309_v61  ;;  %v313_v3 = vadd.f32 %v312_v1, %v189_v57 }
 0x1d5   :  { %564 = vst [vmem:[%s1034_s11 + $0x8] sm:$0xff] %v311_v63 }
 0x1d6   :  { %v317_v4 = vmul.f32 1.442695, %v315_v2  ;;  %v316_v5 = vmul.f32 0.5, %v313_v3  ;;  %566 = vst [vmem:[%s1035_s12 + $0x8] sm:$0xff] %v313_v3 }
 0x1d8   :  { %762 = vpow2.f32 %v317_v4  ;;  %v319_v6 = vmul.f32 1.442695, %v316_v5 }
 0x1da   :  { %764 = vpow2.f32 %v319_v6 }
 0x1e2   :  { %v763_v8 = vpop.eup %762 }
 0x1e3   :  { %v321_v10 = vmul.f32 %v763_v8, %v41_v7 }
 0x1e4   :  { %v765_v11 = vpop.eup %764 }
 0x1e5   :  { %v322_v12 = vmul.f32 %v765_v11, %v42_v9  ;;  %v323_v13 = vadd.f32 %v321_v10, %v307_v59 }
 0x1e7   :  { %v324_v14 = vadd.f32 %v322_v12, %v311_v63 }
 0x1e9   :  { %v325_v15 = vpack.c.bf16 %v324_v14, %v323_v13 }
 0x1eb   :  { %687 = vmatmul.mubr.bf16.vlgmr.msra.gmra.mrb[4].mxu0 %v325_v15 }
 0x2be   :  { %v431_v19 = vpop.f32.mrb[4].mxu0 }
 0x2bf   :  { %v432_v20 = vadd.f32 %v605_v18, %v431_v19  ;;  %v688_v21 = vpop.f32.mrb[5].mxu0 }
 0x2c0   :  { %v434_v22 = vpop.f32.mrb[6].mxu0 }
 0x2c1   :  { %v435_v23 = vadd.f32 %v605_v18, %v434_v22  ;;  %v689_v24 = vpop.f32.mrb[7].mxu0  ;;  %v438_v25 = vmax.f32 %v432_v20, 0.0 }
 0x2c3   :  { %v439_v26 = vmax.f32 %v435_v23, 0.0 }
 0x2c5   :  { %v440_v27 = vpack.c.bf16 %v439_v26, %v438_v25 }
 0x2c7   :  { %707 = vmatmul.mubr.bf16.vlgmr.msra.gmra.mrb[4].mxu1 %v440_v27 }
 0x39a   :  { %v546_v28 = vpop.f32.mrb[4].mxu1 }
 0x39b   :  { %v547_v29 = vadd.f32 %v614_v0, %v546_v28  ;;  %v708_v30 = vpop.f32.mrb[5].mxu1 }
 0x39c   :  { %v549_v31 = vpop.f32.mrb[6].mxu1 }
 0x39d   :  { %v553_v32 = vmul.f32 0.5, %v547_v29  ;;  %v550_v33 = vadd.f32 %v614_v0, %v549_v31  ;;  %v709_v34 = vpop.f32.mrb[7].mxu1 }
 0x39f   :  { %766 = vtanh.f32 %v553_v32  ;;  %v554_v35 = vmul.f32 0.5, %v550_v33 }
 0x3a1   :  { %768 = vtanh.f32 %v554_v35 }
 0x3a9   :  { %v767_v36 = vpop.eup %766 }
 0x3aa   :  { %v557_v37 = vadd.f32 1.0, %v767_v36 }
 0x3ab   :  { %v769_v38 = vpop.eup %768 }
 0x3ac   :  { %v559_v39 = vmul.f32 0.5, %v557_v37  ;;  %v558_v40 = vadd.f32 1.0, %v769_v38 }
 0x3ae   :  { %561 = vst [vmem:[%s1039_s10] sm:$0xff] %v559_v39  ;;  %v560_v41 = vmul.f32 0.5, %v558_v40 }
 0x3b0   :  { %562 = vst [vmem:[%s1039_s10 + $0x8] sm:$0xff] %v560_v41 }

</bundles_post_ra>
